<compile_context>
chip_gen: v7x
topology: tpu7x:2x2x1
jax: 0.10.0
libtpu: 0.0.40
codegen_flags: <defaults>
</compile_context>

<pallas_src>
import functools

import jax
import jax.numpy as jnp
import numpy as np
from jax.experimental import pallas as pl
from jax.experimental.pallas import tpu as pltpu


def _round_up(x, m):
    return ((x + m - 1) // m) * m


# ---------------------------------------------------------------------------
# Parameters & offline folding of the frequency-domain linear chain.
# ---------------------------------------------------------------------------
def make_fits_params(key, seq_len, pred_len, enc_in, cut_freq, individual=False):
    """Deterministic synthetic parameters for the complex freq_upsampler Linear."""
    assert not individual, "individual=True not supported"
    length_ratio = (seq_len + pred_len) / seq_len
    out_f = int(cut_freq * length_ratio)
    k1, k2, k3, k4 = jax.random.split(key, 4)
    bound = 1.0 / float(np.sqrt(cut_freq))
    w_re = jax.random.uniform(k1, (out_f, cut_freq), jnp.float32, -bound, bound)
    w_im = jax.random.uniform(k2, (out_f, cut_freq), jnp.float32, -bound, bound)
    b_re = jax.random.uniform(k3, (out_f,), jnp.float32, -bound, bound)
    b_im = jax.random.uniform(k4, (out_f,), jnp.float32, -bound, bound)
    return dict(w_re=w_re, w_im=w_im, b_re=b_re, b_im=b_im)


def _build_folded_matrices(params, seq_len, pred_len, cut_freq):
    """Fold rfft-truncate -> complex Linear -> zero-padded irfft -> *length_ratio
    into one real matrix G [L, P] and one bias row [1, P] (done once, in XLA)."""
    L, P, dom = seq_len, pred_len, cut_freq
    length_ratio = (L + P) / L
    out_f = int(dom * length_ratio)
    F_full = int((L + P) / 2 + 2)      # zero-padded rfft length used by FITS
    Nout = 2 * (F_full - 1)            # irfft output length (default n)
    assert out_f <= F_full

    # Truncated forward DFT (time -> first `dom` bins): X = x@C - i * x@S
    t = jnp.arange(L, dtype=jnp.float32)[:, None]
    f = jnp.arange(dom, dtype=jnp.float32)[None, :]
    ang = 2.0 * jnp.pi * t * f / L
    C = jnp.cos(ang)                                        # [L, dom]
    S = jnp.sin(ang)                                        # [L, dom]

    # Inverse rfft for the last P samples only; Hermitian doubling weights,
    # 1/Nout normalization and length_ratio folded in:  low_xy = Yre@A + Yim@Bm
    f2 = jnp.arange(out_f, dtype=jnp.float32)[:, None]
    t2 = jnp.arange(Nout - P, Nout, dtype=jnp.float32)[None, :]
    ang2 = 2.0 * jnp.pi * f2 * t2 / Nout
    herm_w = jnp.where((f2 == 0) | (f2 == (F_full - 1)), 1.0, 2.0)
    sc = length_ratio / Nout
    A = sc * herm_w * jnp.cos(ang2)                         # [out_f, P]
    Bm = -sc * herm_w * jnp.sin(ang2)                       # [out_f, P]

    WrT = params["w_re"].T                                  # [dom, out_f]
    WiT = params["w_im"].T
    br = params["b_re"][None, :]                            # [1, out_f]
    bi = params["b_im"][None, :]

    # yre = xn@(C@WrT + S@WiT) + br ; yim = xn@(C@WiT - S@WrT) + bi
    # low_xy = yre@A + yim@Bm = xn@G + bias
    G = (C @ WrT + S @ WiT) @ A + (C @ WiT - S @ WrT) @ Bm  # [L, P]
    bias = br @ A + bi @ Bm                                 # [1, P]
    return G, bias


# ---------------------------------------------------------------------------
# Kernels.
# ---------------------------------------------------------------------------
def _fits_kernel_rows(x_ref, g_ref, b_ref, o_ref, *, seq_len, pad_cols,
                      compute_dtype):
    """Row-major tile: rows = (batch*channel), lanes = time (padded to 128)."""
    x = x_ref[...]                                          # [bm, L_pad] f32
    mean = jnp.sum(x, axis=1, keepdims=True) * (1.0 / seq_len)   # zero pad -> exact
    xc = x - mean
    ssq = jnp.sum(xc * xc, axis=1, keepdims=True)
    if pad_cols:                                            # padded cols contribute mean^2 each
        ssq = ssq - float(pad_cols) * mean * mean
    var = ssq * (1.0 / (seq_len - 1)) + 1e-5
    std = jnp.sqrt(var)                                     # [bm, 1]
    # r*std == 1  =>  out = (xn@G + b)*std + mean == xc@G + b*std + mean
    y = jnp.dot(xc.astype(compute_dtype), g_ref[...],
                preferred_element_type=jnp.float32)         # [bm, P_pad]
    o_ref[...] = (y + b_ref[...] * std + mean).astype(o_ref.dtype)


def _fits_kernel_chan(x_ref, gt_ref, b_ref, o_ref, *, seq_len, compute_dtype):
    """Channel-major tile: sublanes = time, lanes = channels (native layout)."""
    x = x_ref[0]                                            # [L, bn] f32
    mean = jnp.sum(x, axis=0, keepdims=True) * (1.0 / seq_len)   # [1, bn]
    xc = x - mean
    var = jnp.sum(xc * xc, axis=0, keepdims=True) * (1.0 / (seq_len - 1)) + 1e-5
    std = jnp.sqrt(var)                                     # [1, bn]
    y = jnp.dot(gt_ref[...], xc.astype(compute_dtype),
                preferred_element_type=jnp.float32)         # [P_pad, bn]
    o_ref[0] = (y + b_ref[...] * std + mean).astype(o_ref.dtype)


# ---------------------------------------------------------------------------
# Wrappers.
# ---------------------------------------------------------------------------
def _forward_channel_major(history_data, G, bias, *, B, L, N, P, block_cols,
                           compute_dtype, out_dtype):
    x = history_data[..., 0].astype(jnp.float32)            # [B, L, N], free squeeze

    N128 = _round_up(N, 128)
    bn = min(_round_up(block_cols, 128), N128)
    # v7x megacore: keep >= 2 parallel grid steps when the problem permits.
    if B * ((N128 + bn - 1) // bn) < 2 and bn > 128:
        bn = _round_up(bn // 2, 128)
    N_pad = _round_up(N, bn)
    if N_pad != N:
        x = jnp.pad(x, ((0, 0), (0, 0), (0, N_pad - N)))

    P_pad = _round_up(P, 8)                                  # sublane-aligned only
    GT = jnp.pad(G.T, ((0, P_pad - P), (0, 0))).astype(compute_dtype)  # [P_pad, L]
    b_col = jnp.pad(bias.T, ((0, P_pad - P), (0, 0)))                   # [P_pad, 1] f32

    grid = (B, N_pad // bn)
    itemsize = jnp.dtype(compute_dtype).itemsize
    out_isize = jnp.dtype(out_dtype).itemsize
    vmem_bytes = (2 * L * bn * 4 + 2 * P_pad * bn * out_isize
                  + 2 * P_pad * L * itemsize + 2 * P_pad * 128 * 4 + (4 << 20))
    vmem_limit = int(min(max(vmem_bytes, 16 << 20), 48 << 20))

    cost = pl.CostEstimate(
        flops=int(2 * B * N_pad * L * P_pad), transcendentals=0,
        bytes_accessed=int(B * L * N_pad * 4 + B * P_pad * N_pad * out_isize
                           + P_pad * L * itemsize))

    kernel = functools.partial(_fits_kernel_chan, seq_len=L,
                               compute_dtype=compute_dtype)
    out = pl.pallas_call(
        kernel,
        out_shape=jax.ShapeDtypeStruct((B, P_pad, N_pad), out_dtype),
        grid=grid,
        in_specs=[
            pl.BlockSpec((1, L, bn), lambda b, j: (b, 0, j)),    # native-layout x tile
            pl.BlockSpec((P_pad, L), lambda b, j: (0, 0)),       # folded G^T (constant)
            pl.BlockSpec((P_pad, 1), lambda b, j: (0, 0)),       # folded bias (constant)
        ],
        out_specs=pl.BlockSpec((1, P_pad, bn), lambda b, j: (b, 0, j)),
        compiler_params=pltpu.CompilerParams(
            dimension_semantics=("parallel", "parallel"),
            vmem_limit_bytes=vmem_limit),
        cost_estimate=cost,
    )(x, GT, b_col)

    if P_pad != P or N_pad != N:
        out = out[:, :P, :N]
    return out[..., None]                                     # [B, P, N, 1]


def _forward_row_major(history_data, G, bias, *, B, L, N, P, block_rows,
                       compute_dtype, out_dtype):
    x = history_data[..., 0].astype(jnp.float32)              # [B, L, N]
    x = jnp.transpose(x, (0, 2, 1)).reshape(B * N, L)          # [M, L]
    M = B * N

    L_pad = _round_up(L, 128)        # lane / MXU-K aligned (stats fixed in-kernel)
    P_pad = _round_up(P, 128)        # lane-dense output stores

    M8 = _round_up(M, 8)
    if 16 <= M8 <= 2 * block_rows:
        bm = _round_up((M8 + 1) // 2, 8)   # two balanced tiles (v7x megacore)
    else:
        bm = block_rows
    bm = min(bm, M8)
    M_pad = _round_up(M, bm)
    if M_pad != M or L_pad != L:
        x = jnp.pad(x, ((0, M_pad - M), (0, L_pad - L)))

    G_p = jnp.pad(G, ((0, L_pad - L), (0, P_pad - P))).astype(compute_dtype)  # [L_pad, P_pad]
    b_row = jnp.pad(bias, ((0, 0), (0, P_pad - P)))                            # [1, P_pad] f32

    grid = (M_pad // bm,)
    itemsize = jnp.dtype(compute_dtype).itemsize
    out_isize = jnp.dtype(out_dtype).itemsize
    vmem_bytes = (2 * bm * L_pad * 4 + 2 * bm * P_pad * out_isize
                  + 2 * L_pad * P_pad * itemsize + 2 * 8 * P_pad * 4 + (4 << 20))
    vmem_limit = int(min(max(vmem_bytes, 16 << 20), 48 << 20))

    cost = pl.CostEstimate(
        flops=int(2 * M_pad * L_pad * P_pad), transcendentals=0,
        bytes_accessed=int(M_pad * L_pad * 4 + M_pad * P_pad * out_isize
                           + L_pad * P_pad * itemsize))

    kernel = functools.partial(_fits_kernel_rows, seq_len=L, pad_cols=L_pad - L,
                               compute_dtype=compute_dtype)
    out = pl.pallas_call(
        kernel,
        out_shape=jax.ShapeDtypeStruct((M_pad, P_pad), out_dtype),
        grid=grid,
        in_specs=[
            pl.BlockSpec((bm, L_pad), lambda i: (i, 0)),         # x row tile
            pl.BlockSpec((L_pad, P_pad), lambda i: (0, 0)),      # folded G (constant)
            pl.BlockSpec((1, P_pad), lambda i: (0, 0)),          # folded bias (constant)
        ],
        out_specs=pl.BlockSpec((bm, P_pad), lambda i: (i, 0)),
        compiler_params=pltpu.CompilerParams(
            dimension_semantics=("parallel",),
            vmem_limit_bytes=vmem_limit),
        cost_estimate=cost,
    )(x, G_p, b_row)

    out = out[:M, :P].reshape(B, N, P)
    out = jnp.transpose(out, (0, 2, 1))[..., None]              # [B, P, N, 1]
    return out


def fits_forward(history_data, future_data, params, *, seq_len, pred_len,
                 enc_in, cut_freq, block_rows=512, block_cols=512,
                 compute_dtype=jnp.bfloat16, out_dtype=jnp.float32):
    del future_data  # unused by the torch forward as well
    B, L, N, _ = history_data.shape
    assert L == seq_len and N == enc_in
    P = pred_len

    G, bias = _build_folded_matrices(params, seq_len, pred_len, cut_freq)

    if N >= 128:
        # Native [B, L, N] layout: no wrapper transposes (dominant HBM saving).
        return _forward_channel_major(history_data, G, bias, B=B, L=L, N=N, P=P,
                                      block_cols=block_cols,
                                      compute_dtype=compute_dtype,
                                      out_dtype=out_dtype)
    # Few channels: lanes would be wasted; fall back to the row-major path.
    return _forward_row_major(history_data, G, bias, B=B, L=L, N=N, P=P,
                              block_rows=block_rows,
                              compute_dtype=compute_dtype, out_dtype=out_dtype)


# ---------------------------------------------------------------------------
# Pure-JAX reference mirroring the torch forward (uses jnp.fft).
# ---------------------------------------------------------------------------
def fits_reference(history_data, params, *, pred_len, cut_freq):
    x = history_data[..., 0].astype(jnp.float32)             # [B, L, N]
    B, L, N = x.shape
    P = pred_len
    dom = cut_freq
    length_ratio = (L + P) / L
    out_f = int(dom * length_ratio)
    F_full = int((L + P) / 2 + 2)
    mean = jnp.mean(x, axis=1, keepdims=True)
    xc = x - mean
    var = jnp.sum(xc * xc, axis=1, keepdims=True) / (L - 1) + 1e-5
    xn = xc / jnp.sqrt(var)
    spec = jnp.fft.rfft(xn, axis=1)[:, :dom, :]               # [B, dom, N]
    W = params["w_re"] + 1j * params["w_im"]                  # [out_f, dom]
    b = params["b_re"] + 1j * params["b_im"]
    y = jnp.einsum("bfn,of->bon", spec, W) + b[None, :, None]  # [B, out_f, N]
    full = jnp.zeros((B, F_full, N), jnp.complex64).at[:, :out_f, :].set(y)
    low_xy = jnp.fft.irfft(full, axis=1) * length_ratio       # [B, Nout, N]
    xy = low_xy * jnp.sqrt(var) + mean
    return xy[:, -P:, :][..., None]


def _run_and_check(key, B, L, P, N, C, compute_dtype, rtol, atol):
    k_hist, k_fut, k_par = jax.random.split(key, 3)
    history = jax.random.normal(k_hist, (B, L, N, 1), jnp.float32)
    future = jax.random.normal(k_fut, (B, P, N, 1), jnp.float32)
    params = make_fits_params(k_par, L, P, N, C, individual=False)
    out = fits_forward(history, future, params, seq_len=L, pred_len=P,
                       enc_in=N, cut_freq=C, compute_dtype=compute_dtype)
    out = jax.block_until_ready(out)
    assert out.shape == (B, P, N, 1)
    ref = fits_reference(history, params, pred_len=P, cut_freq=C)
    np.testing.assert_allclose(np.asarray(out), np.asarray(ref),
                               rtol=rtol, atol=atol)


if __name__ == "__main__":
    key = jax.random.PRNGKey(0)
    k1, k2, k3 = jax.random.split(key, 3)
    # Row-major fallback (N < 128): f32 and bf16 MXU paths.
    _run_and_check(k1, 2, 16, 8, 4, 5, jnp.float32, rtol=5e-3, atol=5e-3)
    _run_and_check(k1, 2, 16, 8, 4, 5, jnp.bfloat16, rtol=5e-2, atol=5e-2)
    # Channel-major fast path (N = 128, native layout, 2x1 parallel grid).
    _run_and_check(k2, 2, 32, 16, 128, 8, jnp.float32, rtol=5e-3, atol=5e-3)
    _run_and_check(k2, 2, 32, 16, 128, 8, jnp.bfloat16, rtol=5e-2, atol=5e-2)
    # Larger M (=512) exercises a balanced 2-step parallel grid in row-major.
    _run_and_check(k3, 16, 32, 16, 32, 8, jnp.float32, rtol=5e-3, atol=5e-3)
    print("KERNEL_OK")
</pallas_src>

<mosaic_0001>
module attributes {stable_mosaic.version = 11 : i64} {
  func.func @_fits_kernel_rows(%arg0: i32, %arg1: memref<8x128xf32, #tpu.memory_space<vmem>>, %arg2: memref<128x128xf32, #tpu.memory_space<vmem>>, %arg3: memref<1x128xf32, #tpu.memory_space<vmem>>, %arg4: memref<8x128xf32, #tpu.memory_space<vmem>>) attributes {dimension_semantics = [#tpu.dimension_semantics<parallel>], iteration_bounds = array<i64: 1>, scalar_prefetch = 0 : i64, scratch_operands = 0 : i64, tpu.core_type = #tpu.core_type<tc>, window_params = [{transform_indices = @transform_0, window_bounds = array<i64: 8, 128>}, {pipeline_mode = #tpu.pipeline_mode<synchronous>, transform_indices = @transform_1, window_bounds = array<i64: 128, 128>}, {pipeline_mode = #tpu.pipeline_mode<synchronous>, transform_indices = @transform_2, window_bounds = array<i64: 1, 128>}, {transform_indices = @transform_3, window_bounds = array<i64: 8, 128>}]} {
    %c0 = arith.constant 0 : index
    %c0_0 = arith.constant 0 : index
    %0 = vector.load %arg1[%c0, %c0_0] : memref<8x128xf32, #tpu.memory_space<vmem>>, vector<8x128xf32>
    %cst = arith.constant dense<0.000000e+00> : vector<8xf32>
    %1 = vector.multi_reduction <add>, %0, %cst [1] : vector<8x128xf32> to vector<8xf32>
    %2 = vector.shape_cast %1 : vector<8xf32> to vector<8x1xf32>
    %cst_1 = arith.constant 6.250000e-02 : f32
    %3 = vector.broadcast %cst_1 : f32 to vector<8x1xf32>
    %4 = arith.mulf %2, %3 : vector<8x1xf32>
    %5 = vector.broadcast %4 : vector<8x1xf32> to vector<8x128xf32>
    %6 = arith.subf %0, %5 : vector<8x128xf32>
    %7 = arith.mulf %6, %6 : vector<8x128xf32>
    %cst_2 = arith.constant dense<0.000000e+00> : vector<8xf32>
    %8 = vector.multi_reduction <add>, %7, %cst_2 [1] : vector<8x128xf32> to vector<8xf32>
    %9 = vector.shape_cast %8 : vector<8xf32> to vector<8x1xf32>
    %cst_3 = arith.constant 1.120000e+02 : f32
    %10 = vector.broadcast %cst_3 : f32 to vector<8x1xf32>
    %11 = arith.mulf %10, %4 : vector<8x1xf32>
    %12 = arith.mulf %11, %4 : vector<8x1xf32>
    %13 = arith.subf %9, %12 : vector<8x1xf32>
    %cst_4 = arith.constant 0.0666666701 : f32
    %14 = vector.broadcast %cst_4 : f32 to vector<8x1xf32>
    %15 = arith.mulf %13, %14 : vector<8x1xf32>
    %cst_5 = arith.constant 9.99999974E-6 : f32
    %16 = vector.broadcast %cst_5 : f32 to vector<8x1xf32>
    %17 = arith.addf %15, %16 : vector<8x1xf32>
    %18 = math.sqrt %17 : vector<8x1xf32>
    %c0_6 = arith.constant 0 : index
    %c0_7 = arith.constant 0 : index
    %19 = vector.load %arg2[%c0_6, %c0_7] : memref<128x128xf32, #tpu.memory_space<vmem>>, vector<128x128xf32>
    %cst_8 = arith.constant dense<0.000000e+00> : vector<8x128xf32>
    %20 = tpu.matmul %6, %19, %cst_8 {dimension_numbers = #tpu.dot_dimension_numbers<[1], [0], [0], [1], [0, 0, 1, 1], [], []>} : vector<8x128xf32>, vector<128x128xf32>, vector<8x128xf32> -> vector<8x128xf32>
    %c0_9 = arith.constant 0 : index
    %c0_10 = arith.constant 0 : index
    %21 = vector.load %arg3[%c0_9, %c0_10] : memref<1x128xf32, #tpu.memory_space<vmem>>, vector<1x128xf32>
    %22 = vector.broadcast %21 : vector<1x128xf32> to vector<8x128xf32>
    %23 = vector.broadcast %18 : vector<8x1xf32> to vector<8x128xf32>
    %24 = arith.mulf %22, %23 : vector<8x128xf32>
    %25 = arith.addf %20, %24 : vector<8x128xf32>
    %26 = vector.broadcast %4 : vector<8x1xf32> to vector<8x128xf32>
    %27 = arith.addf %25, %26 : vector<8x128xf32>
    %c0_11 = arith.constant 0 : index
    %c0_12 = arith.constant 0 : index
    %28 = vector.load %arg4[%c0_11, %c0_12] : memref<8x128xf32, #tpu.memory_space<vmem>>, vector<8x128xf32>
    tpu.vector_store %arg4[%c0_11, %c0_12], %27 {strides = array<i32>} : memref<8x128xf32, #tpu.memory_space<vmem>>, vector<8x128xf32>,
    return
  }
  func.func @transform_0(%arg0: i32) -> (i32, i32) {
    %c0_i32 = arith.constant 0 : i32
    %c0_i32_0 = arith.constant 0 : i32
    return %arg0, %c0_i32 : i32, i32
  }
  func.func @transform_1(%arg0: i32) -> (i32, i32) {
    %c0_i32 = arith.constant 0 : i32
    %c0_i32_0 = arith.constant 0 : i32
    %c0_i32_1 = arith.constant 0 : i32
    return %c0_i32, %c0_i32_0 : i32, i32
  }
  func.func @transform_2(%arg0: i32) -> (i32, i32) {
    %c0_i32 = arith.constant 0 : i32
    %c0_i32_0 = arith.constant 0 : i32
    %c0_i32_1 = arith.constant 0 : i32
    return %c0_i32, %c0_i32_0 : i32, i32
  }
  func.func @transform_3(%arg0: i32) -> (i32, i32) {
    %c0_i32 = arith.constant 0 : i32
    %c0_i32_0 = arith.constant 0 : i32
    return %arg0, %c0_i32 : i32, i32
  }
}

</mosaic_0001>

<bundles_post_ra>
// kernel: tpu_custom_call.1
= control target key start
LH: loop header
LB: loop body
LE: loop exit
PB: predicated region body
PF: predicated region fallthrough
CT: control target
= control target key end

     0   :  { %8 = vsyncpa [#allocation3], 0  ;;  %s406_s0 = inlined_call_operand.hbm [shape: f32[8,128], index: 0, kind: input, shape index: {}]   ;;  %s407_s1 = inlined_call_operand.hbm [shape: f32[128,128], index: 1, kind: input, shape index: {}]   ;;  %s408_s2 = inlined_call_operand.vmem [shape: f32[1,128], index: 2, kind: input, shape index: {}]   ;;  %s409_s3 = inlined_call_operand.hbm [shape: f32[8,128], index: 3, kind: output, shape index: {}]  }
   0x1   :  { %9 = vsyncpa [#allocation6], 0 }
   0x2   :  { %10 = vsyncpa [#allocation4], 0  ;;  %s332_s12 = smov [#allocation2]   ;;  %s333_s14 = smov [#allocation5]  }
   0x3   :  { %s17_s13 = sshll.u32 %s332_s12, 4  ;;  %s26_s15 = sshll.u32 %s333_s14, 4  ;;  %s18_s13 = int_to_ptr.vmem [resolvable:$true] %s17_s13  ;;  %s360_s15 = int_to_ptr.vmem [resolvable:$true] %s26_s15 }
   0x4   :  { %s260_s18 = scalar_lea.hbm %s406_s0, 128 }
   0x5   :  { %p261_p0 = scmp.ne.s32.totalorder %s406_s0, %s260_s18  ;;  %p264_p1 = scmp.lt.u32.totalorder %s260_s18, %s406_s0 }
   0x7   :  { %p266_p2 = pnand %p264_p1, %p261_p0 }
   0x9   :  { %269 = shalt.err (!%p266_p2)
}
   0xa   :  { %s270_s23 = scalar_lea.vmem %s18_s13, 128  ;;  %p275_p4 = scmp.lt.s32.totalorder %s18_s13, %s18_s13 }
   0xb   :  { %p271_p3 = scmp.ne.s32.totalorder %s18_s13, %s270_s23  ;;  %p276_p5 = scmp.lt.s32.totalorder %s270_s23, %s270_s23 }
   0xd   :  { %p277_p6 = por %p276_p5, %p275_p4 }
   0xf   :  { %p278_p7 = pnand %p277_p6, %p271_p3 }
  0x11   :  { %281 = shalt.err (!%p278_p7)
}
  0x12   :  { %20 = dma.hbm_to_vmem [thread:$0]  %s406_s0, 128, %s18_s13, [#allocation3]  }
  0x13   :  { %s282_s28 = scalar_lea.hbm %s407_s1, 2048 }
  0x14   :  { %p283_p8 = scmp.ne.s32.totalorder %s407_s1, %s282_s28  ;;  %p286_p9 = scmp.lt.u32.totalorder %s282_s28, %s407_s1 }
  0x16   :  { %p288_p10 = pnand %p286_p9, %p283_p8 }
  0x18   :  { %291 = shalt.err (!%p288_p10)
}
  0x19   :  { %s292_s6 = scalar_lea.vmem %s360_s15, 2048  ;;  %p297_p12 = scmp.lt.s32.totalorder %s360_s15, %s360_s15 }
  0x1a   :  { %p293_p11 = scmp.ne.s32.totalorder %s360_s15, %s292_s6  ;;  %p298_p13 = scmp.lt.s32.totalorder %s292_s6, %s292_s6 }
  0x1c   :  { %p299_p0 = por %p298_p13, %p297_p12 }
  0x1e   :  { %p300_p1 = pnand %p299_p0, %p293_p11 }
  0x20   :  { %303 = shalt.err (!%p300_p1)
}
  0x21   :  { %s334_s0 = smov 128   ;;  %s335_s7 = smov 8  }
  0x22   :  { %32 = dma.hbm_to_vmem [thread:$0]  %s407_s1, 2048, %s360_s15, [#allocation6], %s334_s0, %s334_s0, %s335_s7  }
  0x23   :  { %326 = dma.done.wait [#allocation3], 128  }
  0x24   :  { %327 = vsyncadd [#allocation3], 4294967168 }
  0x25   :  { %328 = dma.done.wait [#allocation6], 2048  }
  0x26   :  { %329 = vsyncadd [#allocation6], 4294965248  ;;  %v336_v0 = vmov 0.0|0.0   ;;  %v41_v1 = vld [vmem:[#allocation2] sm:$0xff]  ;;  %v61_v2 = vld [vmem:[#allocation5] sm:$0xff]  ;;  %vm337_vm0 = vmmov 0  }
  0x27   :  { %226 = vmatprep.subr.bf16.mxu0 %v336_v0  ;;  %v62_v3 = vld [vmem:[#allocation5 + $0x8] sm:$0xff]  ;;  %42 = vadd.xlane.f32.xlu0 %v41_v1  ;;  %v63_v5 = vld [vmem:[#allocation5 + $0x10] sm:$0xff]  ;;  %v64_v6 = vld [vmem:[#allocation5 + $0x18] sm:$0xff]  ;;  %v338_v19 = vmov 0.0   ;;  %s339_s11 = smov [#allocation7]  }
  0x28   :  { %v227_v4 = vpack.c.bf16 %v62_v3, %v61_v2  ;;  %v230_v7 = vpack.c.bf16 %v64_v6, %v63_v5  ;;  %v65_v8 = vld [vmem:[#allocation5 + $0x20] sm:$0xff]  ;;  %v66_v9 = vld [vmem:[#allocation5 + $0x28] sm:$0xff]  ;;  %v67_v11 = vld [vmem:[#allocation5 + $0x30] sm:$0xff]  ;;  %223 = vmatprep.mubr.msk.f32.mxu0 %vm337_vm0, %v338_v19  ;;  %s163_s12 = sshll.u32 %s339_s11, 4  ;;  %s164_s12 = int_to_ptr.vmem [resolvable:$true] %s163_s12 }
  0x29   :  { %v233_v10 = vpack.c.bf16 %v66_v9, %v65_v8  ;;  %v68_v12 = vld [vmem:[#allocation5 + $0x38] sm:$0xff]  ;;  %v69_v14 = vld [vmem:[#allocation5 + $0x40] sm:$0xff]  ;;  %v70_v15 = vld [vmem:[#allocation5 + $0x48] sm:$0xff]  ;;  %s304_s13 = scalar_lea.vmem %s164_s12, 128  ;;  %p309_p3 = scmp.lt.s32.totalorder %s164_s12, %s164_s12 }
  0x2a   :  { %228 = vmatpush3.bf16.msra.mxu0 %v227_v4  ;;  %v236_v13 = vpack.c.bf16 %v68_v12, %v67_v11  ;;  %v239_v16 = vpack.c.bf16 %v70_v15, %v69_v14  ;;  %v71_v17 = vld [vmem:[#allocation5 + $0x50] sm:$0xff]  ;;  %v72_v18 = vld [vmem:[#allocation5 + $0x58] sm:$0xff]  ;;  %v73_v21 = vld [vmem:[#allocation5 + $0x60] sm:$0xff]  ;;  %p305_p2 = scmp.ne.s32.totalorder %s164_s12, %s304_s13  ;;  %p310_p4 = scmp.lt.s32.totalorder %s304_s13, %s304_s13 }
  0x2b   :  { %229 = vmatprep.subr.bf16.mxu0 %v336_v0  ;;  %v242_v20 = vpack.c.bf16 %v72_v18, %v71_v17  ;;  %v74_v22 = vld [vmem:[#allocation5 + $0x68] sm:$0xff]  ;;  %v75_v24 = vld [vmem:[#allocation5 + $0x70] sm:$0xff]  ;;  %v76_v25 = vld [vmem:[#allocation5 + $0x78] sm:$0xff] }
  0x2c   :  { %v245_v23 = vpack.c.bf16 %v74_v22, %v73_v21  ;;  %v248_v26 = vpack.c.bf16 %v76_v25, %v75_v24  ;;  %v173_v42 = vld [vmem:[%s408_s2] ss:$0 sm:$0xff]  ;;  %p311_p5 = por %p310_p4, %p309_p3 }
  0x2e   :  { %231 = vmatpush3.bf16.msra.mxu0 %v230_v7  ;;  %p312_p6 = pnand %p311_p5, %p305_p2 }
  0x2f   :  { %232 = vmatprep.subr.bf16.mxu0 %v336_v0 }
  0x32   :  { %234 = vmatpush3.bf16.msra.mxu0 %v233_v10 }
  0x33   :  { %235 = vmatprep.subr.bf16.mxu0 %v336_v0 }
  0x36   :  { %237 = vmatpush3.bf16.msra.mxu0 %v236_v13 }
  0x37   :  { %238 = vmatprep.subr.bf16.mxu0 %v336_v0 }
  0x3a   :  { %240 = vmatpush3.bf16.msra.mxu0 %v239_v16 }
  0x3b   :  { %241 = vmatprep.subr.bf16.mxu0 %v336_v0 }
  0x3e   :  { %243 = vmatpush3.bf16.msra.mxu0 %v242_v20 }
  0x3f   :  { %244 = vmatprep.subr.bf16.mxu0 %v336_v0 }
  0x42   :  { %246 = vmatpush3.bf16.msra.mxu0 %v245_v23 }
  0x43   :  { %247 = vmatprep.subr.bf16.mxu0 %v336_v0 }
  0x46   :  { %249 = vmatpush3.bf16.msra.mxu0 %v248_v26 }
  0xb4   :  { %v43_v27 = vpop.xlane.xlu0 %42 }
  0xb5   :  { %v44_v28 = vmul.f32 0.0625, %v43_v27 }
  0xb7   :  { %v45_v29 = vsub.f32 %v41_v1, %v44_v28  ;;  %v49_v31 = vmul.f32 112.0, %v44_v28 }
  0xb9   :  { %224 = vmatmul.mubr.f32.vlgmr.msra.gmra.mrb[0].mxu0 %v45_v29  ;;  %v46_v30 = vmul.f32 %v45_v29, %v45_v29  ;;  %v50_v33 = vmul.f32 %v49_v31, %v44_v28 }
  0xbb   :  { %47 = vadd.xlane.f32.xlu0 %v46_v30 }
 0x148   :  { %v48_v32 = vpop.xlane.xlu0 %47 }
 0x149   :  { %v51_v34 = vsub.f32 %v48_v32, %v50_v33 }
 0x14b   :  { %v52_v35 = vmul.f32 0.06666667, %v51_v34 }
 0x14d   :  { %v53_v36 = vadd.f32 1e-05, %v52_v35 }
 0x14f   :  { %258 = vrsqrt.f32 %v53_v36  ;;  %vm56_vm1 = vcmp.eq.f32.partialorder %v53_v36, inf  ;;  %v59_v40 = vand.u32 2147483648, %v53_v36  ;;  %vm58_vm2 = vcmp.eq.f32.partialorder %v53_v36, 0.0 }
 0x159   :  { %v259_v37 = vpop.eup %258 }
 0x15a   :  { %v55_v38 = vmul.f32 %v259_v37, %v53_v36 }
 0x15c   :  { %v57_v39 = vsel %vm56_vm1, %v53_v36, %v55_v38 }
 0x15d   :  { %v60_v41 = vsel %vm58_vm2, %v59_v40, %v57_v39 }
 0x15e   :  { %v84_v43 = vmul.f32 %v173_v42, %v60_v41 }
 0x18c   :  { %v151_v44 = vpop.f32.mrb[0].mxu0 }
 0x18d   :  { %v152_v45 = vadd.f32 %v151_v44, %v84_v43  ;;  %v225_v46 = vpop.f32.mrb[1].mxu0 }
 0x18f   :  { %v155_v47 = vadd.f32 %v152_v45, %v44_v28 }
 0x191   :  { %156 = vst [vmem:[#allocation7] sm:$0xff] %v155_v47 }
 0x192   :  { %315 = shalt.err (!%p312_p6)
}
 0x193   :  { %s316_s2 = scalar_lea.hbm %s409_s3, 128 }
 0x194   :  { %p317_p7 = scmp.ne.s32.totalorder %s409_s3, %s316_s2  ;;  %p320_p8 = scmp.lt.u32.totalorder %s316_s2, %s409_s3 }
 0x196   :  { %p322_p9 = pnand %p320_p8, %p317_p7 }
 0x198   :  { %325 = shalt.err (!%p322_p9)
}
 0x199   :  { %166 = dma.vmem_to_hbm [thread:$0]  %s164_s12, 128, %s409_s3, [#allocation4]  }
 0x19a   :  { %330 = dma.done.wait [#allocation4], 128  }
 0x19b   :  { %331 = vsyncadd [#allocation4], 4294967168 }
 0x19c   :  { %170 = vsyncpa [#allocation3], 1 }
 0x19d   :  { %171 = vsyncpa [#allocation6], 1 }
 0x19e   :  { %172 = vsyncpa [#allocation4], 1 }

</bundles_post_ra>
